<compile_context>
chip_gen: v7x
topology: tpu7x:2x2x1
jax: 0.10.0
libtpu: 0.0.40
codegen_flags: <defaults>
</compile_context>

<pallas_src>
import functools

import jax
import jax.numpy as jnp
from jax import lax
from jax.experimental import pallas as pl
from jax.experimental.pallas import tpu as pltpu


def _dot_graph_kernel(mapped_ref, cols_ref, out_ref, *, n_actual):
    """Produce one (TQ, N_pad) row slab of the adjacency for one batch element.

    mapped_ref: (N_pad, D)   Linear(x) in compute dtype (bf16 by default)
    cols_ref:   (1, N_pad)   int32 column indices (resident, DMA'd once)
    out_ref:    (TQ, N_pad)  adjacency row slab
    """
    j = pl.program_id(1)
    tq, n_pad = out_ref.shape
    row0 = pl.multiple_of(j * tq, tq)

    q = mapped_ref[pl.ds(row0, tq), :]          # (TQ, D)
    k = mapped_ref[...]                         # (N_pad, D)

    # adj = q @ k^T, contracting the feature axis of both operands (no
    # materialized transpose); bf16 MXU with f32 accumulation by default.
    adj = lax.dot_general(
        q, k,
        dimension_numbers=(((1,), (1,)), ((), ())),
        preferred_element_type=jnp.float32)     # (TQ, N_pad) f32

    # leaky_relu(x) == max(x, 0.01 * x): 2 full-width passes instead of 3.
    adj = jnp.maximum(adj, 0.01 * adj)

    # Kill the diagonal (self-similarity) and the padded columns BEFORE the row
    # max so neither contributes to the softmax.  One compare + one select.
    cols = cols_ref[...]                                          # (1, N_pad)
    rows = row0 + lax.broadcasted_iota(jnp.int32, (tq, 1), 0)     # (TQ, 1)
    kill = cols == rows                                           # (TQ, N_pad)
    if n_actual < n_pad:          # static branch
        kill = jnp.logical_or(kill, cols >= n_actual)
    adj = jnp.where(kill, -1.0e30, adj)

    # Numerically stable row softmax; reductions on the XLU, exp/recip on EUP.
    m = jnp.max(adj, axis=-1, keepdims=True)
    e = jnp.exp(adj - m)
    inv = pl.reciprocal(jnp.sum(e, axis=-1, keepdims=True), approx=True)
    out = e * inv

    # "+ eye": killed entries have softmax exactly 0 and the reference diagonal
    # is exactly 1.0 (exp(-1e6) underflows in f32), so write 1.0 there.  Padded
    # columns also receive 1.0 but are sliced away by the wrapper.
    out = jnp.where(kill, 1.0, out)
    out_ref[...] = out.astype(out_ref.dtype)


def _vmem_capacity_bytes():
    try:
        return int(pltpu.get_tpu_info().vmem_capacity_bytes)
    except Exception:
        return 64 * 1024 * 1024        # conservative (v7x per-TensorCore)


def _select_row_tile(n_pad, d, out_bytes, c_bytes, budget):
    """Largest 128-multiple row tile dividing n_pad that fits `budget` VMEM."""
    lane = 128
    d_pad = max(((d + lane - 1) // lane) * lane, lane)
    fixed = 2 * n_pad * d_pad * c_bytes          # mapped slab (dbl-buffered, lane-padded)
    fixed += 2 * 8 * n_pad * 4                   # column-index row (dbl-buffered)
    best = 128
    tq = 128
    while tq <= min(n_pad, 2048):
        if n_pad % tq == 0:
            need = (fixed
                    + 2 * tq * n_pad * out_bytes   # output slab (double-buffered)
                    + 4 * tq * n_pad * 4)          # in-kernel f32 temporaries
            if need <= budget:
                best = tq
        tq += 128
    return best


def dot_graph_construction(node_features, weight, bias, *,
                           out_dtype=jnp.bfloat16, compute_dtype=jnp.bfloat16):
    """node_features: (bs, N, D); weight: (D, D) PyTorch-style (out, in); bias: (D,).

    Defaults use bf16 storage/compute with f32 MXU accumulation (fast path);
    pass out_dtype=compute_dtype=jnp.float32 for a high-fidelity result.
    """
    bs, n, d = node_features.shape

    # Linear hoisted out of the kernel (O(N*D^2), negligible next to the N^2
    # adjacency); f32 accumulation, then stored at compute_dtype for the MXU.
    mapped = jnp.einsum("bnd,kd->bnk", node_features, weight,
                        preferred_element_type=jnp.float32)
    mapped = (mapped + bias.astype(jnp.float32)).astype(compute_dtype)

    # Pad N to a multiple of 128 so adjacency rows are lane-dense (full vst).
    n_pad = ((n + 127) // 128) * 128
    if n_pad != n:
        mapped = jnp.pad(mapped, ((0, 0), (0, n_pad - n), (0, 0)))
    cols = jnp.arange(n_pad, dtype=jnp.int32).reshape(1, n_pad)

    out_bytes = jnp.dtype(out_dtype).itemsize
    c_bytes = jnp.dtype(compute_dtype).itemsize
    capacity = _vmem_capacity_bytes()
    budget = (capacity * 3) // 4                 # ~48 MiB v7x, ~96 MiB v5e/v6e
    tq = _select_row_tile(n_pad, d, out_bytes, c_bytes, budget)

    d_pad = max(((d + 127) // 128) * 128, 128)
    need = (2 * n_pad * d_pad * c_bytes + 2 * 8 * n_pad * 4
            + 2 * tq * n_pad * out_bytes + 4 * tq * n_pad * 4)
    vmem_limit = int(min(capacity - (4 << 20), max(32 << 20, need + (8 << 20))))

    kernel = functools.partial(_dot_graph_kernel, n_actual=n)

    adj = pl.pallas_call(
        kernel,
        out_shape=jax.ShapeDtypeStruct((bs, n_pad, n_pad), out_dtype),
        grid_spec=pltpu.PrefetchScalarGridSpec(
            num_scalar_prefetch=0,
            grid=(bs, n_pad // tq),
            in_specs=[
                # mapped: block index constant in j -> DMA'd once per batch element.
                pl.BlockSpec((None, n_pad, d), lambda i, j: (i, 0, 0)),
                # column-index row: constant -> resident for the whole kernel.
                pl.BlockSpec((1, n_pad), lambda i, j: (0, 0)),
            ],
            # TODO(synk): at very large N (TQ pinned to 128) sweeping
            # pipeline_mode=pl.Buffered(3) on this out_spec can hide the store DMA.
            out_specs=pl.BlockSpec((None, tq, n_pad), lambda i, j: (i, j, 0)),
        ),
        compiler_params=pltpu.CompilerParams(
            # Linear is hoisted, so the row-block axis has no dependency and both
            # axes can megacore-shard (v7x: 2 TensorCores even at bs == 1).
            dimension_semantics=("parallel", "parallel"),
            vmem_limit_bytes=vmem_limit,
        ),
    )(mapped, cols)

    if n_pad != n:
        adj = adj[:, :n, :n]
    return adj


if __name__ == "__main__":
    bs, N, D = 2, 8, 32

    key = jax.random.PRNGKey(0)
    kx, kw, kb = jax.random.split(key, 3)

    x = jax.random.normal(kx, (bs, N, D), dtype=jnp.float32)
    # Deterministic Linear(D, D) parameters (PyTorch-like uniform range).
    bound = 1.0 / (D ** 0.5)
    W = jax.random.uniform(kw, (D, D), minval=-bound, maxval=bound, dtype=jnp.float32)
    b = jax.random.uniform(kb, (D,), minval=-bound, maxval=bound, dtype=jnp.float32)

    # Plain-JAX reference mirroring the PyTorch module (f32).
    mapped = jnp.einsum("bnd,kd->bnk", x, W) + b
    a = jnp.einsum("bnd,bmd->bnm", mapped, mapped)
    eye = jnp.eye(N, dtype=jnp.float32)[None]
    a = a - eye * 1.0e8
    a = jnp.where(a >= 0, a, 0.01 * a)
    ref = jax.nn.softmax(a, axis=-1) + eye

    # High-fidelity path: f32 compute + f32 output (tolerance covers approx recip).
    adj_f32 = jax.block_until_ready(
        dot_graph_construction(x, W, b,
                               out_dtype=jnp.float32, compute_dtype=jnp.float32))
    assert adj_f32.shape == ref.shape
    assert jnp.allclose(adj_f32, ref, atol=2e-3, rtol=2e-3), "f32 path mismatch"

    # Default fast path: bf16 compute + bf16 output (f32 MXU accumulation).
    adj_bf16 = jax.block_until_ready(dot_graph_construction(x, W, b))
    assert adj_bf16.dtype == jnp.bfloat16
    assert jnp.allclose(adj_bf16.astype(jnp.float32), ref, atol=5e-2, rtol=5e-2), \
        "bf16 path mismatch"

    print("KERNEL_OK")
</pallas_src>

<mosaic_0001>
module attributes {stable_mosaic.version = 11 : i64} {
  func.func @_dot_graph_kernel(%arg0: i32, %arg1: i32, %arg2: memref<1x128x32xf32, #tpu.memory_space<vmem>>, %arg3: memref<1x128xi32, #tpu.memory_space<vmem>>, %arg4: memref<1x128x128xf32, #tpu.memory_space<vmem>>) attributes {dimension_semantics = [#tpu.dimension_semantics<parallel>, #tpu.dimension_semantics<parallel>], iteration_bounds = array<i64: 2, 1>, scalar_prefetch = 0 : i64, scratch_operands = 0 : i64, tpu.core_type = #tpu.core_type<tc>, window_params = [{transform_indices = @transform_0, window_bounds = array<i64: 1, 128, 32>}, {pipeline_mode = #tpu.pipeline_mode<synchronous>, transform_indices = @transform_1, window_bounds = array<i64: 1, 128>}, {transform_indices = @transform_2, window_bounds = array<i64: 1, 128, 128>}]} {
    %c128_i32 = arith.constant 128 : i32
    %0 = arith.muli %arg1, %c128_i32 : i32
    %1 = tpu.assume_multiple %0, 128 : i32
    %c0 = arith.constant 0 : index
    %2 = arith.index_cast %1 : i32 to index
    %c0_0 = arith.constant 0 : index
    %3 = vector.load %arg2[%c0, %2, %c0_0] : memref<1x128x32xf32, #tpu.memory_space<vmem>>, vector<1x128x32xf32>
    %4 = vector.shape_cast %3 : vector<1x128x32xf32> to vector<128x32xf32>
    %c0_1 = arith.constant 0 : index
    %c0_2 = arith.constant 0 : index
    %c0_3 = arith.constant 0 : index
    %5 = vector.load %arg2[%c0_1, %c0_2, %c0_3] : memref<1x128x32xf32, #tpu.memory_space<vmem>>, vector<1x128x32xf32>
    %6 = vector.shape_cast %5 : vector<1x128x32xf32> to vector<128x32xf32>
    %cst = arith.constant dense<0.000000e+00> : vector<128x128xf32>
    %7 = tpu.matmul %4, %6, %cst {dimension_numbers = #tpu.dot_dimension_numbers<[1], [1], [0], [0], [0, 0, 1, 0], [], []>} : vector<128x32xf32>, vector<128x32xf32>, vector<128x128xf32> -> vector<128x128xf32>
    %cst_4 = arith.constant 0.00999999977 : f32
    %8 = vector.broadcast %cst_4 : f32 to vector<128x128xf32>
    %9 = arith.mulf %8, %7 : vector<128x128xf32>
    %10 = arith.maximumf %7, %9 : vector<128x128xf32>
    %c0_5 = arith.constant 0 : index
    %c0_6 = arith.constant 0 : index
    %11 = vector.load %arg3[%c0_5, %c0_6] : memref<1x128xi32, #tpu.memory_space<vmem>>, vector<1x128xi32>
    %12 = tpu.iota {dimensions = array<i32: 0>} : vector<128x1xi32>
    %13 = vector.broadcast %1 : i32 to vector<128x1xi32>
    %14 = arith.addi %13, %12 : vector<128x1xi32>
    %15 = vector.broadcast %11 : vector<1x128xi32> to vector<128x128xi32>
    %16 = vector.broadcast %14 : vector<128x1xi32> to vector<128x128xi32>
    %17 = arith.cmpi eq, %15, %16 : vector<128x128xi32>
    %c8_i32 = arith.constant 8 : i32
    %18 = vector.broadcast %c8_i32 : i32 to vector<1x128xi32>
    %19 = arith.cmpi sge, %11, %18 : vector<1x128xi32>
    %20 = vector.broadcast %19 : vector<1x128xi1> to vector<128x128xi1>
    %21 = arith.ori %17, %20 : vector<128x128xi1>
    %cst_7 = arith.constant -1.000000e+30 : f32
    %22 = vector.broadcast %cst_7 : f32 to vector<128x128xf32>
    %23 = arith.select %21, %22, %10 : vector<128x128xi1>, vector<128x128xf32>
    %cst_8 = arith.constant dense<0xFF800000> : vector<128xf32>
    %24 = vector.multi_reduction <maximumf>, %23, %cst_8 [1] : vector<128x128xf32> to vector<128xf32>
    %25 = vector.shape_cast %24 : vector<128xf32> to vector<128x1xf32>
    %26 = vector.broadcast %25 : vector<128x1xf32> to vector<128x128xf32>
    %27 = arith.subf %23, %26 : vector<128x128xf32>
    %28 = math.exp %27 : vector<128x128xf32>
    %cst_9 = arith.constant dense<0.000000e+00> : vector<128xf32>
    %29 = vector.multi_reduction <add>, %28, %cst_9 [1] : vector<128x128xf32> to vector<128xf32>
    %30 = vector.shape_cast %29 : vector<128xf32> to vector<128x1xf32>
    %31 = tpu.reciprocal %30 {approx = true} : vector<128x1xf32> -> vector<128x1xf32>
    %32 = vector.broadcast %31 : vector<128x1xf32> to vector<128x128xf32>
    %33 = arith.mulf %28, %32 : vector<128x128xf32>
    %cst_10 = arith.constant 1.000000e+00 : f32
    %34 = vector.broadcast %cst_10 : f32 to vector<128x128xf32>
    %35 = arith.select %21, %34, %33 : vector<128x128xi1>, vector<128x128xf32>
    %c0_11 = arith.constant 0 : index
    %c0_12 = arith.constant 0 : index
    %c0_13 = arith.constant 0 : index
    %36 = vector.load %arg4[%c0_11, %c0_12, %c0_13] : memref<1x128x128xf32, #tpu.memory_space<vmem>>, vector<1x128x128xf32>
    %37 = vector.shape_cast %36 : vector<1x128x128xf32> to vector<128x128xf32>
    %38 = vector.shape_cast %35 : vector<128x128xf32> to vector<1x128x128xf32>
    tpu.vector_store %arg4[%c0_11, %c0_12, %c0_13], %38 {strides = array<i32>} : memref<1x128x128xf32, #tpu.memory_space<vmem>>, vector<1x128x128xf32>,
    return
  }
  func.func @transform_0(%arg0: i32, %arg1: i32) -> (i32, i32, i32) {
    %c0_i32 = arith.constant 0 : i32
    %c0_i32_0 = arith.constant 0 : i32
    %c0_i32_1 = arith.constant 0 : i32
    return %arg0, %c0_i32, %c0_i32_0 : i32, i32, i32
  }
  func.func @transform_1(%arg0: i32, %arg1: i32) -> (i32, i32) {
    %c0_i32 = arith.constant 0 : i32
    %c0_i32_0 = arith.constant 0 : i32
    %c0_i32_1 = arith.constant 0 : i32
    return %c0_i32, %c0_i32_0 : i32, i32
  }
  func.func @transform_2(%arg0: i32, %arg1: i32) -> (i32, i32, i32) {
    %c0_i32 = arith.constant 0 : i32
    %c0_i32_0 = arith.constant 0 : i32
    return %arg0, %arg1, %c0_i32 : i32, i32, i32
  }
}

</mosaic_0001>

<bundles_post_ra>
// kernel: tpu_custom_call.1
= control target key start
LH: loop header
LB: loop body
LE: loop exit
PB: predicated region body
PF: predicated region fallthrough
CT: control target
= control target key end

     0   :  { %7 = vsyncpa [#allocation3], 0  ;;  %s1843_s0 = inlined_call_operand.vmem [shape: f32[2,128,32], index: 0, kind: input, shape index: {}]   ;;  %s1844_s1 = inlined_call_operand.vmem [shape: s32[1,128], index: 1, kind: input, shape index: {}]   ;;  %s1845_s2 = inlined_call_operand.hbm [shape: f32[2,128,128], index: 2, kind: output, shape index: {}]  }
   0x1   :  { %9 = vsyncpa [#allocation3 + $0x1], 0  ;;  %s1246_s9 = smov 0   ;;  %s1248_s10 = smov 0  }
   0x2   :  { %s1250_s11 = smov 0   ;;  %s1252_s12 = smov 0  }
   0x3   :  { %s1254_s13 = smov 0   ;;  %s1256_s14 = smov 0  }
   0x4 LB: > { %s826_s15 = sadd.s32 4294967295, %s1225_s14   ;;  %s827_s16 = sadd.s32 4294967294, %s1225_s14   ;;  %s1225_s14 = sphi %s1256_s14, %s15_s14   ;;  %s1221_s13 = sphi %s1254_s13, %s1892_s13   ;;  %s1217_s12 = sphi %s1252_s12, %s1891_s12   ;;  %s1213_s11 = sphi %s1250_s11, %s1890_s11   ;;  %s1209_s10 = sphi %s1248_s10, %s1889_s10   ;;  %s1205_s9 = sphi %s1246_s9, %s1888_s9  }
   0x5   : > { %s27_s17 = sadd.s32 1, %s1221_s13  ;;  %s83_s18 = sadd.s32 1, %s1213_s11 }
   0x6   : > { %p29_p0 = scmp.ge.s32.totalorder %s27_s17, 2  ;;  %p93_p1 = scmp.ne.s32.totalorder %s1213_s11, %s1209_s10 }
   0x7   : > { %p94_p2 = scmp.eq.s32.totalorder %s826_s15, 1  ;;  %p99_p3 = scmp.ne.s32.totalorder %s1209_s10, %s1205_s9 }
   0x8   : > { %s1894_s17 = smov (%p29_p0, %s27_s17), 0  ;;  %p100_p5 = scmp.eq.s32.totalorder %s827_s16, 1 }
   0x9   : > { %p1286_p4 = por %p94_p2, %p93_p1  ;;  %s78_s20 = ssub.s32 %s1221_s13, %s1894_s17 }
   0xa   : > { %p830_p6 = scmp.ge.s32.totalorder %s1225_s14, 1  ;;  %p81_p7 = scmp.eq.s32.totalorder %s78_s20, 0 }
   0xb   : > { %p1293_p8 = por %p100_p5, %p99_p3  ;;  %p129_p9 = scmp.lt.s32.totalorder %s1225_s14, 3 }
   0xc   : > { %s1299_s22 = scalar_select %p81_p7, %s1213_s11, %s83_s18  }
   0xd   : > { %p130_p10 = pnand %p830_p6, %p129_p9 }
   0xe   : > { %p151_p11 = scmp.lt.s32.totalorder (!%p130_p10), %s1217_s12, 1  ;;  %vm191_vm0 = vcmask (!%p130_p10), 261120   ;;  %v466_v25 = vlaneseq (!%p130_p10)  ;;  %v465_v26 = vld [vmem:[%s1844_s1] sm:$0x1] (!%p130_p10)  ;;  %v1227_v29 = vmov (!%p130_p10), 0   ;;  %s148_s30 = sand.u32 (!%p130_p10), 1, %s1209_s10  }
   0xf   : > { %133 = sbr.rel (%p130_p10) target bundleno = 673 (0x2a1), region = 28  ;;  %vm1310_vm1 = vmpackc.low (!%p130_p10), %vm191_vm0, %vm191_vm0  ;;  %vm520_vm2 = vcmp.ge.s32.totalorder (!%p130_p10), %v465_v26, 8  ;;  %s831_s3 = sshll.u32 (!%p130_p10), %s148_s30, 7 }
  0x10   : > { %v1413_v27 = vshrl.u32 (!%p130_p10), %v466_v25, 7  ;;  %v521_v30 = vsel (!%p130_p10), %vm520_vm2, 1, %v1227_v29  ;;  %s1723_s4 = scalar_lea.vmem (!%p130_p10), [#allocation2], %s831_s3  ;;  %s872_s5 = sshll.u32 (!%p130_p10), %s1217_s12, 11 }
  0x11   : > { %s751_s6 = sshll.u32 (!%p130_p10), %s1723_s4, 4  ;;  %s1788_s15 = scalar_lea.hbm (!%p130_p10), %s1845_s2, %s872_s5  ;;  %s1790_s6 = int_to_ptr.vmem [resolvable:$true] %s751_s6 }
  0x12   : > { %v502_v28 = vsub.s32 (!%p130_p10), 0, %v1413_v27  ;;  %v476_v31 = vadd.s32 (!%p130_p10), 72, %v1413_v27  ;;  %v468_v34 = vadd.s32 (!%p130_p10), 8, %v1413_v27  ;;  %v470_v35 = vadd.s32 (!%p130_p10), 24, %v1413_v27  ;;  %s1147_s16 = scalar_lea.vmem (!%p130_p10), %s1790_s6, 2048  ;;  %s1228_s18 = smov (!%p130_p10), [#allocation2]  }
  0x13   : > { %v478_v49 = vadd.s32 (!%p130_p10), 88, %v1413_v27  ;;  %v475_v53 = vadd.s32 (!%p130_p10), 64, %v1413_v27  ;;  %v469_v63 = vadd.s32 (!%p130_p10), 16, %v1413_v27  ;;  %p1148_p12 = scmp.ne.s32.totalorder (!%p130_p10), %s1790_s6, %s1147_s16  ;;  %s1151_s20 = sshll.u32 (!%p130_p10), %s1228_s18, 4  ;;  %s1152_s20 = int_to_ptr.vmem [resolvable:$false] %s1151_s20 }
  0x14   : > { %v1417_v32 = vrot.slane (!%p130_p10), %v465_v26, %v502_v28  ;;  %v1419_v33 = vrot.slane (!%p130_p10), %v521_v30, %v502_v28  ;;  %v479_v26 = vadd.s32 (!%p130_p10), 96, %v1413_v27  ;;  %p1154_p1 = scmp.lt.s32.totalorder (!%p130_p10), %s1790_s6, %s1152_s20 }
  0x15   : > { %p1149_p13 = pnand (!%p130_p10), %p1148_p12, %p1286_p4 }
  0x16   : > { %s152_s23 = scalar_select %p151_p11, %s1217_s12, 1  ;;  %vm513_vm3 = vcmp.eq.s32.totalorder %v1417_v32, %v476_v31  ;;  %vm526_vm4 = vcmp.eq.s32.totalorder %v1419_v33, 1  ;;  %vm505_vm5 = vcmp.eq.s32.totalorder %v1417_v32, %v468_v34  ;;  %vm507_vm7 = vcmp.eq.s32.totalorder %v1417_v32, %v470_v35 }
  0x17   : > { %vm1428_vm6 = vmor %vm513_vm3, %vm526_vm4  ;;  %vm504_vm9 = vcmp.eq.s32.totalorder %v1417_v32, %v1413_v27  ;;  %vm515_vm12 = vcmp.eq.s32.totalorder %v1417_v32, %v478_v49  ;;  %vm512_vm13 = vcmp.eq.s32.totalorder %v1417_v32, %v475_v53  ;;  %v1873_v49 = vmov 0  ;;  %s1797_s12 = scalar_lea.sflag [#allocation3], %s148_s30  ;;  %p1150_p0 = pneg %p1149_p13 }
  0x18   : > { %s871_s24 = sshll.u32 %s152_s23, 7  ;;  %vm1435_vm8 = vmor %vm505_vm5, %vm526_vm4  ;;  %s1153_s23 = scalar_lea.vmem %s1152_s20, 4096 }
  0x19   : > { %s1306_s27 = scalar_lea.vmem %s1843_s0, %s871_s24  ;;  %vm1451_vm10 = vmor %vm507_vm7, %vm526_vm4  ;;  %p1155_p2 = scmp.lt.s32.totalorder %s1153_s23, %s1147_s16 }
  0x1a   : > { %v175_v1 = vld [vmem:[%s1306_s27] sm:$0xff]  ;;  %v176_v2 = vld [vmem:[%s1306_s27 + $0x8] sm:$0xff]  ;;  %v177_v3 = vld [vmem:[%s1306_s27 + $0x10] sm:$0xff] }
  0x1b   : > { %v961_v4 = vpack.c.bf16 %v176_v2, %v175_v1  ;;  %v178_v5 = vld [vmem:[%s1306_s27 + $0x18] sm:$0xff]  ;;  %937 = vmatprep.mubr.msk.f32.mxu0 %vm191_vm0, %v175_v1  ;;  %v183_v7 = vld [vmem:[%s1306_s27 + $0x40] sm:$0xff]  ;;  %v180_v9 = vld [vmem:[%s1306_s27 + $0x28] sm:$0xff]  ;;  %p1156_p3 = por %p1155_p2, %p1154_p1 }
  0x1c   : > { %v967_v6 = vpack.c.bf16 %v178_v5, %v177_v3  ;;  %v179_v8 = vld [vmem:[%s1306_s27 + $0x20] sm:$0xff]  ;;  %949 = vmatprep.mubr.msk.f32.mxu1 %vm191_vm0, %v183_v7  ;;  %v181_v11 = vld [vmem:[%s1306_s27 + $0x30] sm:$0xff]  ;;  %v182_v12 = vld [vmem:[%s1306_s27 + $0x38] sm:$0xff] }
  0x1d   : > { %963 = vmatprep.subr.msk.bf16.mxu0 %vm1310_vm1, %v961_v4  ;;  %1009 = vmatprep.subr.msk.bf16.mxu1 %vm1310_vm1, %v961_v4  ;;  %v973_v10 = vpack.c.bf16 %v180_v9, %v179_v8  ;;  %v979_v13 = vpack.c.bf16 %v182_v12, %v181_v11  ;;  %v184_v14 = vld [vmem:[%s1306_s27 + $0x48] sm:$0xff]  ;;  %v185_v16 = vld [vmem:[%s1306_s27 + $0x50] sm:$0xff]  ;;  %v186_v17 = vld [vmem:[%s1306_s27 + $0x58] sm:$0xff]  ;;  %p1157_p5 = pnand %p1156_p3, %p1150_p0 }
  0x1e   : > { %966 = vmatpush3.bf16.xpose.msk.msra.mxu0 %vm1310_vm1, %v961_v4  ;;  %1017 = vmatpush3.bf16.xpose.msk.msra.mxu1 %vm1310_vm1, %v961_v4  ;;  %v985_v15 = vpack.c.bf16 %v184_v14, %v183_v7  ;;  %v991_v18 = vpack.c.bf16 %v186_v17, %v185_v16  ;;  %v187_v19 = vld [vmem:[%s1306_s27 + $0x60] sm:$0xff]  ;;  %v188_v20 = vld [vmem:[%s1306_s27 + $0x68] sm:$0xff]  ;;  %v189_v22 = vld [vmem:[%s1306_s27 + $0x70] sm:$0xff]  ;;  %v472_v7 = vadd.s32 40, %v1413_v27 }
  0x1f   : > { %969 = vmatprep.subr.msk.bf16.mxu0 %vm1310_vm1, %v967_v6  ;;  %1010 = vmatprep.subr.msk.bf16.mxu1 %vm1310_vm1, %v967_v6  ;;  %v997_v21 = vpack.c.bf16 %v188_v20, %v187_v19  ;;  %v190_v23 = vld [vmem:[%s1306_s27 + $0x78] sm:$0xff]  ;;  %vm1463_vm11 = vmor %vm504_vm9, %vm526_vm4 }
  0x20   : > { %v1003_v24 = vpack.c.bf16 %v190_v23, %v189_v22  ;;  %vm1490_vm14 = vmor %vm515_vm12, %vm526_vm4  ;;  %vm509_vm2 = vcmp.eq.s32.totalorder %v1417_v32, %v472_v7 }
  0x21   : > { %vm1498_vm15 = vmor %vm512_vm13, %vm526_vm4 }
  0x22   : > { %vm1541_vm9 = vmor %vm509_vm2, %vm526_vm4 }
  0x26   : > { %972 = vmatpush3.bf16.xpose.msk.msra.mxu0 %vm1310_vm1, %v967_v6  ;;  %1018 = vmatpush3.bf16.xpose.msk.msra.mxu1 %vm1310_vm1, %v967_v6 }
  0x27   : > { %975 = vmatprep.subr.msk.bf16.mxu0 %vm1310_vm1, %v973_v10  ;;  %1011 = vmatprep.subr.msk.bf16.mxu1 %vm1310_vm1, %v973_v10 }
  0x2e   : > { %978 = vmatpush3.bf16.xpose.msk.msra.mxu0 %vm1310_vm1, %v973_v10  ;;  %1019 = vmatpush3.bf16.xpose.msk.msra.mxu1 %vm1310_vm1, %v973_v10 }
  0x2f   : > { %981 = vmatprep.subr.msk.bf16.mxu0 %vm1310_vm1, %v979_v13  ;;  %1012 = vmatprep.subr.msk.bf16.mxu1 %vm1310_vm1, %v979_v13 }
  0x36   : > { %984 = vmatpush3.bf16.xpose.msk.msra.mxu0 %vm1310_vm1, %v979_v13  ;;  %1020 = vmatpush3.bf16.xpose.msk.msra.mxu1 %vm1310_vm1, %v979_v13 }
  0x37   : > { %987 = vmatprep.subr.msk.bf16.mxu0 %vm1310_vm1, %v985_v15  ;;  %1013 = vmatprep.subr.msk.bf16.mxu1 %vm1310_vm1, %v985_v15 }
  0x3e   : > { %990 = vmatpush3.bf16.xpose.msk.msra.mxu0 %vm1310_vm1, %v985_v15  ;;  %1021 = vmatpush3.bf16.xpose.msk.msra.mxu1 %vm1310_vm1, %v985_v15 }
  0x3f   : > { %993 = vmatprep.subr.msk.bf16.mxu0 %vm1310_vm1, %v991_v18  ;;  %1014 = vmatprep.subr.msk.bf16.mxu1 %vm1310_vm1, %v991_v18 }
  0x46   : > { %996 = vmatpush3.bf16.xpose.msk.msra.mxu0 %vm1310_vm1, %v991_v18  ;;  %1022 = vmatpush3.bf16.xpose.msk.msra.mxu1 %vm1310_vm1, %v991_v18 }
  0x47   : > { %999 = vmatprep.subr.msk.bf16.mxu0 %vm1310_vm1, %v997_v21  ;;  %1015 = vmatprep.subr.msk.bf16.mxu1 %vm1310_vm1, %v997_v21 }
  0x4e   : > { %1002 = vmatpush3.bf16.xpose.msk.msra.mxu0 %vm1310_vm1, %v997_v21  ;;  %1023 = vmatpush3.bf16.xpose.msk.msra.mxu1 %vm1310_vm1, %v997_v21 }
  0x4f   : > { %1005 = vmatprep.subr.msk.bf16.mxu0 %vm1310_vm1, %v1003_v24  ;;  %1016 = vmatprep.subr.msk.bf16.mxu1 %vm1310_vm1, %v1003_v24 }
  0x56   : > { %1008 = vmatpush3.bf16.xpose.msk.msra.mxu0 %vm1310_vm1, %v1003_v24  ;;  %1024 = vmatpush3.bf16.xpose.msk.msra.mxu1 %vm1310_vm1, %v1003_v24 }
  0x5d   : > { %938 = vmatmul.mubr.msk.f32.vlgmr.msra.gmra.mrb[0].mxu0 %vm191_vm0, %v176_v2  ;;  %950 = vmatmul.mubr.msk.f32.vlgmr.msra.gmra.mrb[0].mxu1 %vm191_vm0, %v184_v14  ;;  %v477_v2 = vadd.s32 80, %v1413_v27 }
  0x5e   : > { %940 = vmatprep.mubr.msk.f32.mxu0 %vm191_vm0, %v177_v3  ;;  %952 = vmatprep.mubr.msk.f32.mxu1 %vm191_vm0, %v185_v16 }
  0x5f   : > { %vm514_vm1 = vcmp.eq.s32.totalorder %v1417_v32, %v477_v2 }
  0x60   : > { %vm1533_vm7 = vmor %vm514_vm1, %vm526_vm4 }
  0x61   : > { %941 = vmatmul.mubr.msk.f32.gmra.mrb[2].mxu0 %vm191_vm0, %v178_v5  ;;  %953 = vmatmul.mubr.msk.f32.gmra.mrb[2].mxu1 %vm191_vm0, %v186_v17 }
  0x62   : > { %943 = vmatprep.mubr.msk.f32.mxu0 %vm191_vm0, %v179_v8  ;;  %955 = vmatprep.mubr.msk.f32.mxu1 %vm191_vm0, %v187_v19 }
  0x65   : > { %944 = vmatmul.mubr.msk.f32.gmra.mrb[4].mxu0 %vm191_vm0, %v180_v9  ;;  %956 = vmatmul.mubr.msk.f32.gmra.mrb[4].mxu1 %vm191_vm0, %v188_v20 }
  0x66   : > { %946 = vmatprep.mubr.msk.f32.mxu0 %vm191_vm0, %v181_v11  ;;  %958 = vmatprep.mubr.msk.f32.mxu1 %vm191_vm0, %v189_v22  ;;  %v480_v22 = vadd.s32 104, %v1413_v27 }
  0x68   : > { %vm517_vm13 = vcmp.eq.s32.totalorder %v1417_v32, %v480_v22 }
  0x69   : > { %947 = vmatmul.mubr.msk.f32.gmra.mrb[6].mxu0 %vm191_vm0, %v182_v12  ;;  %959 = vmatmul.mubr.msk.f32.gmra.mrb[6].mxu1 %vm191_vm0, %v190_v23  ;;  %v471_v12 = vadd.s32 32, %v1413_v27  ;;  %vm506_vm0 = vcmp.eq.s32.totalorder %v1417_v32, %v469_v63  ;;  %vm1577_vm1 = vmor %vm517_vm13, %vm526_vm4 }
  0x6a   : > { %vm1522_vm3 = vmor %vm506_vm0, %vm526_vm4  ;;  %vm516_vm0 = vcmp.eq.s32.totalorder %v1417_v32, %v479_v26  ;;  %v1874_v49 = vsel %vm1577_vm1, 4294967295, %v1873_v49 }
  0x6b   : > { %vm508_vm5 = vcmp.eq.s32.totalorder %v1417_v32, %v471_v12  ;;  %vm1583_vm2 = vmor %vm516_vm0, %vm526_vm4 }
  0x6c   : > { %vm1551_vm12 = vmor %vm508_vm5, %vm526_vm4 }
 0x130   : > { %v939_v36 = vpop.f32.mrb[0].mxu0  ;;  %v951_v37 = vpop.f32.mrb[0].mxu1 }
 0x131   : > { %v434_v38 = vmul.f32 0.01, %v939_v36  ;;  %v442_v39 = vmul.f32 0.01, %v951_v37  ;;  %v354_v40 = vpop.f32.mrb[1].mxu0  ;;  %v394_v41 = vpop.f32.mrb[1].mxu1 }
 0x132   : > { %v433_v44 = vmul.f32 0.01, %v354_v40  ;;  %v441_v58 = vmul.f32 0.01, %v394_v41 }
 0x133   : > { %v450_v42 = vmax.f32 %v939_v36, %v434_v38  ;;  %v458_v43 = vmax.f32 %v951_v37, %v442_v39  ;;  %v1871_v37 = vmov 0  ;;  %v474_v38 = vadd.s32 56, %v1413_v27 }
 0x134   : > { %v942_v46 = vpop.f32.mrb[2].mxu0  ;;  %v954_v47 = vpop.f32.mrb[2].mxu1  ;;  %v449_v57 = vmax.f32 %v354_v40, %v433_v44  ;;  %v457_v8 = vmax.f32 %v394_v41, %v441_v58  ;;  %v1872_v37 = vsel %vm1551_vm12, 4294967295, %v1871_v37  ;;  %v473_v40 = vadd.s32 48, %v1413_v27 }
 0x135   : > { %v436_v50 = vmul.f32 0.01, %v942_v46  ;;  %v364_v51 = vpop.f32.mrb[3].mxu0  ;;  %v1440_v52 = vpop.f32.mrb[3].mxu1  ;;  %v444_v54 = vmul.f32 0.01, %v954_v47  ;;  %vm511_vm5 = vcmp.eq.s32.totalorder %v1417_v32, %v474_v38 }
 0x136   : > { %v1447_v55 = vsel %vm1428_vm6, -1e+30, %v458_v43  ;;  %v1458_v60 = vsel %vm1435_vm8, -1e+30, %v450_v42  ;;  %v435_v3 = vmul.f32 0.01, %v364_v51  ;;  %vm1605_vm13 = vmor %vm511_vm5, %vm526_vm4 }
 0x137   : > { %v452_v59 = vmax.f32 %v942_v46, %v436_v50  ;;  %577 = vmax.xlane.f32.xlu1 %v1447_v55  ;;  %561 = vmax.xlane.f32.xlu0 %v1458_v60  ;;  %v460_v4 = vmax.f32 %v954_v47, %v444_v54  ;;  %v443_v9 = vmul.f32 0.01, %v1440_v52  ;;  %v1483_v10 = vsel %vm1463_vm11, -1e+30, %v449_v57 }
 0x138   : > { %v945_v62 = vpop.f32.mrb[4].mxu0  ;;  %v1469_v0 = vpop.f32.mrb[4].mxu1  ;;  %v451_v20 = vmax.f32 %v364_v51, %v435_v3  ;;  %v1517_v24 = vsel %vm1498_vm15, -1e+30, %v457_v8  ;;  %v1875_v50 = vmov 0  ;;  %v482_v51 = vadd.s32 120, %v1413_v27 }
 0x139   : > { %v1473_v1 = vsel %vm1451_vm10, -1e+30, %v452_v59  ;;  %v374_v5 = vpop.f32.mrb[5].mxu0  ;;  %v1477_v6 = vpop.f32.mrb[5].mxu1  ;;  %v438_v14 = vmul.f32 0.01, %v945_v62  ;;  %v459_v23 = vmax.f32 %v1440_v52, %v443_v9 }
 0x13a   : > { %v437_v17 = vmul.f32 0.01, %v374_v5  ;;  %v1510_v21 = vsel %vm1490_vm14, -1e+30, %v460_v4  ;;  %v446_v30 = vmul.f32 0.01, %v1469_v0 }
 0x13b   : > { %565 = vmax.xlane.f32.xlu1 %v1473_v1  ;;  %559 = vmax.xlane.f32.xlu0 %v1483_v10  ;;  %v454_v28 = vmax.f32 %v945_v62, %v438_v14  ;;  %v445_v34 = vmul.f32 0.01, %v1477_v6  ;;  %v1547_v36 = vsel %vm1522_vm3, -1e+30, %v451_v20  ;;  %v1559_v39 = vsel %vm1533_vm7, -1e+30, %v459_v23 }
 0x13c   : > { %v948_v15 = vpop.f32.mrb[6].mxu0  ;;  %v1503_v16 = vpop.f32.mrb[6].mxu1  ;;  %v453_v31 = vmax.f32 %v374_v5, %v437_v17  ;;  %v462_v41 = vmax.f32 %v1469_v0, %v446_v30  ;;  %v1876_v50 = vsel %vm1583_vm2, 4294967295, %v1875_v50  ;;  %v481_v52 = vadd.s32 112, %v1413_v27 }
 0x13d   : > { %v384_v18 = vpop.f32.mrb[7].mxu0  ;;  %v1506_v19 = vpop.f32.mrb[7].mxu1  ;;  %v1568_v42 = vsel %vm1541_vm9, -1e+30, %v454_v28  ;;  %v440_v43 = vmul.f32 0.01, %v948_v15  ;;  %v461_v44 = vmax.f32 %v1477_v6, %v445_v34 }
 0x13e   : > { %v1573_v46 = vsel %vm1551_vm12, -1e+30, %v453_v31  ;;  %v439_v47 = vmul.f32 0.01, %v384_v18  ;;  %vm510_vm12 = vcmp.eq.s32.totalorder %v1417_v32, %v473_v40  ;;  %v1595_v54 = vsel %vm1577_vm1, -1e+30, %v462_v41 }
 0x13f   : > { %581 = vmax.xlane.f32.xlu1 %v1510_v21  ;;  %575 = vmax.xlane.f32.xlu0 %v1517_v24  ;;  %v456_v53 = vmax.f32 %v948_v15, %v440_v43  ;;  %v448_v57 = vmul.f32 0.01, %v1503_v16  ;;  %v1600_v59 = vsel %vm1583_vm2, -1e+30, %v461_v44  ;;  %v447_v62 = vmul.f32 0.01, %v1506_v19  ;;  %vm1611_vm0 = vmor %vm510_vm12, %vm526_vm4 }
 0x140   : > { %v455_v58 = vmax.f32 %v384_v18, %v439_v47  ;;  %vm519_vm1 = vcmp.eq.s32.totalorder %v1417_v32, %v482_v51  ;;  %vm518_vm2 = vcmp.eq.s32.totalorder %v1417_v32, %v481_v52 }
 0x141   : > { %v464_v0 = vmax.f32 %v1503_v16, %v448_v57  ;;  %v1622_v2 = vsel %vm1605_vm13, -1e+30, %v456_v53  ;;  %v463_v3 = vmax.f32 %v1506_v19, %v447_v62  ;;  %vm1631_vm12 = vmor %vm519_vm1, %vm526_vm4 }
 0x142   : > { %v1627_v4 = vsel %vm1611_vm0, -1e+30, %v455_v58  ;;  %vm1637_vm5 = vmor %vm518_vm2, %vm526_vm4  ;;  %vm1885_vm4 = vnez %v1874_v49 }
 0x143   : > { %563 = vmax.xlane.f32.xlu1 %v1547_v36  ;;  %579 = vmax.xlane.f32.xlu0 %v1559_v39  ;;  %v1645_v6 = vsel %vm1631_vm12, -1e+30, %v464_v0  ;;  %v1649_v7 = vsel %vm1637_vm5, -1e+30, %v463_v3 }
 0x147   : > { %569 = vmax.xlane.f32.xlu1 %v1568_v42  ;;  %567 = vmax.xlane.f32.xlu0 %v1573_v46 }
 0x14b   : > { %585 = vmax.xlane.f32.xlu1 %v1595_v54  ;;  %583 = vmax.xlane.f32.xlu0 %v1600_v59 }
 0x14f   : > { %573 = vmax.xlane.f32.xlu1 %v1622_v2  ;;  %571 = vmax.xlane.f32.xlu0 %v1627_v4 }
 0x153   : > { %589 = vmax.xlane.f32.xlu1 %v1645_v6  ;;  %587 = vmax.xlane.f32.xlu0 %v1649_v7 }
 0x1c4   : > { %v578_v33 = vpop.xlane.xlu1 %577  ;;  %v562_v9 = vpop.xlane.xlu0 %561 }
 0x1c5   : > { %v600_v8 = vsub.f32 %v1447_v55, %v578_v33  ;;  %v592_v12 = vsub.f32 %v1458_v60, %v562_v9 }
 0x1c7   : > { %v609_v14 = vmul.f32 1.442695, %v592_v12  ;;  %v625_v16 = vmul.f32 1.442695, %v600_v8 }
 0x1c8   : > { %v566_v15 = vpop.xlane.xlu1 %565  ;;  %v560_v17 = vpop.xlane.xlu0 %559 }
 0x1c9   : > { %v594_v18 = vsub.f32 %v1473_v1, %v566_v15  ;;  %1083 = vpow2.f32 %v609_v14  ;;  %v591_v19 = vsub.f32 %v1483_v10, %v560_v17 }
 0x1ca   : > { %1085 = vpow2.f32 %v625_v16 }
 0x1cb   : > { %v607_v20 = vmul.f32 1.442695, %v591_v19  ;;  %v613_v23 = vmul.f32 1.442695, %v594_v18 }
 0x1cc   : > { %v582_v22 = vpop.xlane.xlu1 %581  ;;  %v576_v26 = vpop.xlane.xlu0 %575 }
 0x1cd   : > { %1087 = vpow2.f32 %v607_v20  ;;  %v599_v55 = vsub.f32 %v1517_v24, %v576_v26  ;;  %v602_v28 = vsub.f32 %v1510_v21, %v582_v22 }
 0x1ce   : > { %1089 = vpow2.f32 %v613_v23 }
 0x1cf   : > { %v623_v60 = vmul.f32 1.442695, %v599_v55  ;;  %v629_v1 = vmul.f32 1.442695, %v602_v28 }
 0x1d0   : > { %v564_v30 = vpop.xlane.xlu1 %563  ;;  %v580_v31 = vpop.xlane.xlu0 %579 }
 0x1d1   : > { %v593_v34 = vsub.f32 %v1547_v36, %v564_v30  ;;  %1091 = vpow2.f32 %v623_v60  ;;  %v601_v10 = vsub.f32 %v1559_v39, %v580_v31 }
 0x1d3   : > { %v611_v38 = vmul.f32 1.442695, %v593_v34  ;;  %v1661_v40 = vpop.eup %1083  ;;  %v627_v21 = vmul.f32 1.442695, %v601_v10 }
 0x1d4   : > { %v570_v41 = vpop.xlane.xlu1 %569  ;;  %v568_v24 = vpop.xlane.xlu0 %567  ;;  %641 = vadd.xlane.f32.xlu1 %v1661_v40 }
 0x1d5   : > { %1093 = vpow2.f32 %v611_v38  ;;  %v596_v43 = vsub.f32 %v1568_v42, %v570_v41  ;;  %v595_v44 = vsub.f32 %v1573_v46, %v568_v24  ;;  %v1666_v47 = vpop.eup %1085 }
 0x1d6   : > { %1095 = vpow2.f32 %v629_v1 }
 0x1d7   : > { %v617_v36 = vmul.f32 1.442695, %v596_v43  ;;  %v1668_v51 = vpop.eup %1087  ;;  %v615_v42 = vmul.f32 1.442695, %v595_v44 }
 0x1d8   : > { %v586_v39 = vpop.xlane.xlu1 %585  ;;  %v584_v53 = vpop.xlane.xlu0 %583  ;;  %657 = vadd.xlane.f32.xlu1 %v1666_v47  ;;  %639 = vadd.xlane.f32.xlu0 %v1668_v51 }
 0x1d9   : > { %1097 = vpow2.f32 %v617_v36  ;;  %v604_v52 = vsub.f32 %v1595_v54, %v586_v39  ;;  %v603_v57 = vsub.f32 %v1600_v59, %v584_v53  ;;  %v1674_v58 = vpop.eup %1089 }
 0x1da   : > { %1099 = vpow2.f32 %v627_v21 }
 0x1db   : > { %v633_v46 = vmul.f32 1.442695, %v604_v52  ;;  %v1676_v62 = vpop.eup %1091  ;;  %v631_v33 = vmul.f32 1.442695, %v603_v57 }
 0x1dc   : > { %v574_v0 = vpop.xlane.xlu1 %573  ;;  %645 = vadd.xlane.f32.xlu1 %v1674_v58  ;;  %655 = vadd.xlane.f32.xlu0 %v1676_v62  ;;  %v572_v3 = vpop.xlane.xlu0 %571 }
 0x1dd   : > { %1101 = vpow2.f32 %v633_v46  ;;  %v598_v54 = vsub.f32 %v1622_v2, %v574_v0  ;;  %v597_v8 = vsub.f32 %v1627_v4, %v572_v3 }
 0x1de   : > { %1103 = vpow2.f32 %v615_v42 }
 0x1df   : > { %v1682_v9 = vpop.eup %1093  ;;  %v621_v59 = vmul.f32 1.442695, %v598_v54  ;;  %v619_v16 = vmul.f32 1.442695, %v597_v8 }
 0x1e0   : > { %v1684_v12 = vpop.eup %1095  ;;  %v590_v14 = vpop.xlane.xlu1 %589  ;;  %643 = vadd.xlane.f32.xlu0 %v1682_v9 }
 0x1e1   : > { %1105 = vpow2.f32 %v621_v59  ;;  %661 = vadd.xlane.f32.xlu1 %v1684_v12  ;;  %v606_v15 = vsub.f32 %v1645_v6, %v590_v14  ;;  %v588_v2 = vpop.xlane.xlu0 %587 }
 0x1e2   : > { %1107 = vpow2.f32 %v631_v33  ;;  %v605_v17 = vsub.f32 %v1649_v7, %v588_v2 }
 0x1e3   : > { %v1690_v18 = vpop.eup %1097  ;;  %v637_v4 = vmul.f32 1.442695, %v606_v15 }
 0x1e4   : > { %v1692_v19 = vpop.eup %1099  ;;  %v635_v20 = vmul.f32 1.442695, %v605_v17 }
 0x1e5   : > { %1109 = vpow2.f32 %v637_v4  ;;  %649 = vadd.xlane.f32.xlu1 %v1690_v18  ;;  %659 = vadd.xlane.f32.xlu0 %v1692_v19 }
 0x1e6   : > { %1111 = vpow2.f32 %v619_v16 }
 0x1e7   : > { %v1696_v6 = vpop.eup %1101  ;;  %1113 = vpow2.f32 %v635_v20 }
 0x1e8   : > { %v1698_v22 = vpop.eup %1103 }
 0x1e9   : > { %665 = vadd.xlane.f32.xlu1 %v1696_v6  ;;  %647 = vadd.xlane.f32.xlu0 %v1698_v22 }
 0x1eb   : > { %v1702_v7 = vpop.eup %1105 }
 0x1ec   : > { %v1704_v23 = vpop.eup %1107 }
 0x1ed   : > { %653 = vadd.xlane.f32.xlu1 %v1702_v7  ;;  %663 = vadd.xlane.f32.xlu0 %v1704_v23 }
 0x1ef   : > { %v1708_v26 = vpop.eup %1109 }
 0x1f0   : > { %v1710_v55 = vpop.eup %1111 }
 0x1f1   : > { %669 = vadd.xlane.f32.xlu1 %v1708_v26  ;;  %651 = vadd.xlane.f32.xlu0 %v1710_v55  ;;  %v1714_v28 = vpop.eup %1113 }
 0x1f5   : > { %667 = vadd.xlane.f32.xlu0 %v1714_v28 }
 0x261   : > { %v642_v60 = vpop.xlane.xlu1 %641 }
 0x262   : > { %1115 = vrcp.f32 %v642_v60 }
 0x265   : > { %v658_v30 = vpop.xlane.xlu1 %657  ;;  %v640_v31 = vpop.xlane.xlu0 %639 }
 0x266   : > { %1117 = vrcp.f32 %v658_v30 }
 0x267   : > { %1119 = vrcp.f32 %v640_v31 }
 0x269   : > { %v646_v34 = vpop.xlane.xlu1 %645  ;;  %v656_v1 = vpop.xlane.xlu0 %655 }
 0x26a   : > { %1121 = vrcp.f32 %v646_v34 }
 0x26b   : > { %1123 = vrcp.f32 %v656_v1 }
 0x26c   : > { %v1116_v10 = vpop.eup %1115 }
 0x26d   : > { %v688_v38 = vmul.f32 %v1116_v10, %v1661_v40  ;;  %v644_v43 = vpop.xlane.xlu0 %643 }
 0x26e   : > { %v662_v41 = vpop.xlane.xlu1 %661 }
 0x26f   : > { %1125 = vrcp.f32 %v662_v41  ;;  %v704_v24 = vsel %vm1435_vm8, 1.0, %v688_v38  ;;  %vm1887_vm8 = vnez %v1876_v50 }
 0x270   : > { %1127 = vrcp.f32 %v644_v43  ;;  %v1118_v21 = vpop.eup %1117  ;;  %720 = vst [vmem:[%s1723_s4 + $0x8] sm:$0xff] %v704_v24 }
 0x271   : > { %v1120_v44 = vpop.eup %1119  ;;  %v696_v36 = vmul.f32 %v1118_v21, %v1666_v47 }
 0x272   : > { %v650_v39 = vpop.xlane.xlu1 %649  ;;  %v660_v52 = vpop.xlane.xlu0 %659  ;;  %v687_v40 = vmul.f32 %v1120_v44, %v1668_v51 }
 0x273   : > { %1129 = vrcp.f32 %v650_v39  ;;  %v712_v48 = vsel %vm1428_vm6, 1.0, %v696_v36  ;;  %vm1886_vm6 = vnez %v1872_v37 }
 0x274   : > { %1131 = vrcp.f32 %v660_v52  ;;  %v1122_v53 = vpop.eup %1121  ;;  %728 = vst [vmem:[%s1723_s4 + $0x48] sm:$0xff] %v712_v48  ;;  %v703_v42 = vsel %vm1463_vm11, 1.0, %v687_v40 }
 0x275   : > { %v1124_v57 = vpop.eup %1123  ;;  %719 = vst [vmem:[%s1723_s4] sm:$0xff] %v703_v42  ;;  %v690_v47 = vmul.f32 %v1122_v53, %v1674_v58 }
 0x276   : > { %v666_v46 = vpop.xlane.xlu1 %665  ;;  %v648_v0 = vpop.xlane.xlu0 %647  ;;  %v695_v51 = vmul.f32 %v1124_v57, %v1676_v62 }
 0x277   : > { %1133 = vrcp.f32 %v666_v46  ;;  %v706_v45 = vsel %vm1451_vm10, 1.0, %v690_v47 }
 0x278   : > { %1135 = vrcp.f32 %v648_v0  ;;  %722 = vst [vmem:[%s1723_s4 + $0x18] sm:$0xff] %v706_v45  ;;  %v711_v61 = vsel %vm1498_vm15, 1.0, %v695_v51 }
 0x279   : > { %v1126_v54 = vpop.eup %1125  ;;  %727 = vst [vmem:[%s1723_s4 + $0x40] sm:$0xff] %v711_v61 }
 0x27a   : > { %v1128_v3 = vpop.eup %1127  ;;  %v698_v58 = vmul.f32 %v1126_v54, %v1684_v12  ;;  %v654_v33 = vpop.xlane.xlu1 %653 }
 0x27b   : > { %v664_v8 = vpop.xlane.xlu0 %663  ;;  %v689_v62 = vmul.f32 %v1128_v3, %v1682_v9  ;;  %1137 = vrcp.f32 %v654_v33 }
 0x27c   : > { %v714_v56 = vsel %vm1490_vm14, 1.0, %v698_v58  ;;  %1139 = vrcp.f32 %v664_v8 }
 0x27d   : > { %v1130_v59 = vpop.eup %1129  ;;  %730 = vst [vmem:[%s1723_s4 + $0x58] sm:$0xff] %v714_v56  ;;  %v705_v13 = vsel %vm1522_vm3, 1.0, %v689_v62 }
 0x27e   : > { %v1132_v14 = vpop.eup %1131  ;;  %721 = vst [vmem:[%s1723_s4 + $0x10] sm:$0xff] %v705_v13  ;;  %v692_v12 = vmul.f32 %v1130_v59, %v1690_v18  ;;  %v670_v15 = vpop.xlane.xlu1 %669 }
 0x27f   : > { %v652_v2 = vpop.xlane.xlu0 %651  ;;  %v697_v9 = vmul.f32 %v1132_v14, %v1692_v19  ;;  %1141 = vrcp.f32 %v670_v15 }
 0x280   : > { %v708_v11 = vsel %vm1541_vm9, 1.0, %v692_v12  ;;  %1143 = vrcp.f32 %v652_v2 }
 0x281   : > { %v1134_v16 = vpop.eup %1133  ;;  %724 = vst [vmem:[%s1723_s4 + $0x28] sm:$0xff] %v708_v11  ;;  %v713_v25 = vsel %vm1533_vm7, 1.0, %v697_v9 }
 0x282   : > { %v1136_v17 = vpop.eup %1135  ;;  %729 = vst [vmem:[%s1723_s4 + $0x50] sm:$0xff] %v713_v25  ;;  %v700_v18 = vmul.f32 %v1134_v16, %v1696_v6 }
 0x283   : > { %v668_v4 = vpop.xlane.xlu0 %667  ;;  %v691_v19 = vmul.f32 %v1136_v17, %v1698_v22 }
 0x284   : > { %1145 = vrcp.f32 %v668_v4  ;;  %v716_v35 = vsel %vm1885_vm4, 1.0, %v700_v18 }
 0x285   : > { %v1138_v20 = vpop.eup %1137  ;;  %732 = vst [vmem:[%s1723_s4 + $0x68] sm:$0xff] %v716_v35  ;;  %v707_v29 = vsel %vm1886_vm6, 1.0, %v691_v19 }
 0x286   : > { %v1140_v60 = vpop.eup %1139  ;;  %723 = vst [vmem:[%s1723_s4 + $0x20] sm:$0xff] %v707_v29  ;;  %v694_v6 = vmul.f32 %v1138_v20, %v1702_v7 }
 0x287   : > { %v699_v30 = vmul.f32 %v1140_v60, %v1704_v23 }
 0x288   : > { %v710_v22 = vsel %vm1605_vm13, 1.0, %v694_v6 }
 0x289   : > { %v1142_v49 = vpop.eup %1141  ;;  %726 = vst [vmem:[%s1723_s4 + $0x38] sm:$0xff] %v710_v22  ;;  %v715_v31 = vsel %vm1887_vm8, 1.0, %v699_v30 }
 0x28a   : > { %v1144_v34 = vpop.eup %1143  ;;  %731 = vst [vmem:[%s1723_s4 + $0x60] sm:$0xff] %v715_v31  ;;  %v702_v37 = vmul.f32 %v1142_v49, %v1708_v26 }
 0x28b   : > { %v693_v1 = vmul.f32 %v1144_v34, %v1710_v55 }
 0x28c   : > { %v718_v27 = vsel %vm1631_vm12, 1.0, %v702_v37 }
 0x28d   : > { %734 = vst [vmem:[%s1723_s4 + $0x78] sm:$0xff] %v718_v27  ;;  %v709_v50 = vsel %vm1611_vm0, 1.0, %v693_v1 }
 0x28e   : > { %v1146_v7 = vpop.eup %1145  ;;  %725 = vst [vmem:[%s1723_s4 + $0x30] sm:$0xff] %v709_v50 }
 0x28f   : > { %v701_v23 = vmul.f32 %v1146_v7, %v1714_v28 }
 0x291   : > { %v717_v5 = vsel %vm1637_vm5, 1.0, %v701_v23 }
 0x292   : > { %733 = vst [vmem:[%s1723_s4 + $0x70] sm:$0xff] %v717_v5 }
 0x293   : > { %1160 = shalt.err (!%p1157_p5)
}
 0x294   : > { %s1161_s24 = scalar_lea.hbm %s1788_s15, 2048  ;;  %s1165_s27 = scalar_lea.hbm %s1845_s2, 4096 }
 0x295   : > { %p1162_p6 = scmp.ne.s32.totalorder %s1788_s15, %s1161_s24  ;;  %p1166_p10 = scmp.lt.u32.totalorder %s1788_s15, %s1845_s2 }
 0x296   : > { %p1167_p11 = scmp.lt.u32.totalorder %s1165_s27, %s1161_s24  ;;  %p1169_p13 = scmp.lt.u32.totalorder %s1161_s24, %s1788_s15 }
 0x297   : > { %p1163_p7 = pnand %p1162_p6, %p1286_p4 }
 0x298   : > { %p1168_p12 = por %p1167_p11, %p1166_p10 }
 0x299   : > { %p1164_p9 = pneg %p1163_p7 }
 0x29a   : > { %p1170_p0 = por %p1169_p13, %p1168_p12 }
 0x29c   : > { %p1171_p1 = pnand %p1170_p0, %p1164_p9 }
 0x29e   : > { %1174 = shalt.err (!%p1171_p1)
}
 0x29f   : > { %s1229_s30 = smov 128   ;;  %s1230_s3 = smov 8  }
 0x2a0   : > { %1025 = dma.vmem_to_hbm [thread:$0]  (%p1286_p4), %s1790_s6, 2048, %s1788_s15, %s1797_s12, %s1229_s30, %s1229_s30, %s1230_s3  }
 0x2a1 PF: > { %p1031_p2 = scmp.ge.s32.totalorder %s1225_s14, 2  ;;  %s766_s4 = sand.u32 1, %s1205_s9  }
 0x2a2   : > { %s767_s5 = scalar_lea.sflag [#allocation3], %s766_s4 }
 0x2a3   : > { %p1028_p3 = pnand %p1031_p2, %p1293_p8 }
 0x2a5   : > { %1200 = dma.done.wait (!%p1028_p3), %s767_s5, 2048  }
 0x2a6   : > { %1202 = vsyncadd (!%p1028_p3), %s767_s5, 4294965248  ;;  %s15_s14 = sadd.s32 1, %s1225_s14   ;;  %s1888_s9 = smov %s1209_s10 }
 0x2a7   : > { %p12_p5 = scmp.ge.s32.totalorder %s15_s14, 4   ;;  %s1889_s10 = smov %s1213_s11 }
 0x2a8   : > { %s1890_s11 = smov %s1299_s22  ;;  %s1891_s12 = smov %s1221_s13 }
 0x2a9   : > { %s1892_s13 = smov %s1894_s17  ;;  %14 = sbr.rel (!%p12_p5) target bundleno = 4 (0x4), region = 64 }
 0x2b0   :  { %772 = vsyncpa [#allocation3], 1 }
 0x2b1   :  { %774 = vsyncpa [#allocation3 + $0x1], 1 }

</bundles_post_ra>
